<compile_context>
chip_gen: v5e
topology: v5e:2x2
jax: 0.10.0
libtpu: 0.0.40
codegen_flags: <defaults>
</compile_context>

<pallas_src>
import functools

import jax
import jax.numpy as jnp
from jax.experimental import pallas as pl
from jax.experimental.pallas import tpu as pltpu


def _round_up(v, m):
    return ((v + m - 1) // m) * m


@functools.lru_cache(maxsize=None)
def _vmem_budget():
    """Generation-aware scoped-VMEM limit (leave headroom below physical)."""
    try:
        cap = int(pltpu.get_tpu_info().vmem_capacity_bytes)
    except Exception:
        cap = 64 << 20  # conservative default (v7x per-core VMEM)
    return int(max(32 << 20, min(cap - (16 << 20), 100 << 20)))


def _grid_geometry(num_nodes):
    """Pick (n_pad, tm, tn) with n_pad divisible by both tiles."""
    if num_nodes <= 256:
        n_pad = max(128, _round_up(num_nodes, 128))
        tm = tn = n_pad                      # single tile each way
    else:
        tm, tn = 256, 512
        n_pad = _round_up(num_nodes, 512)
    return n_pad, tm, tn


# ---------------------------------------------------------------------------
# Stage 1: fused feature transform + attention logits
# ---------------------------------------------------------------------------
def _gat_stage1_kernel(x_ref, w_ref, att_ref, xw_ref, alpha_ref):
    """xw = x @ W (all heads fused, bf16 MXU); alpha = xw @ att_mat (f32)."""
    xw = jnp.dot(x_ref[...], w_ref[...],
                 preferred_element_type=jnp.float32)       # [TM, H*Cp] f32
    # lane-dense [TM, 128] store: cols [0,H)=alpha_src, [H,2H)=alpha_dst, rest 0
    alpha_ref[...] = jnp.dot(xw, att_ref[...],
                             preferred_element_type=jnp.float32)
    xw_ref[...] = xw.astype(jnp.bfloat16)


# ---------------------------------------------------------------------------
# Stage 2: online masked edge softmax + aggregation + bias + ReLU
# ---------------------------------------------------------------------------
def _gat_stage2_kernel(adj_ref, xw_ref, asrc_ref, adst_ref, bias_ref, out_ref,
                       m_sc, l_sc, acc_sc, *, heads, cp, concat):
    j = pl.program_id(1)

    @pl.when(j == 0)
    def _():
        m_sc[...] = jnp.full_like(m_sc, -1e30)
        l_sc[...] = jnp.zeros_like(l_sc)
        acc_sc[...] = jnp.zeros_like(acc_sc)

    # additive edge mask, hoisted out of the head loop (1 cmp + 1 sel total)
    madd = jnp.where(adj_ref[...] > 0, 0.0, -1e9).astype(jnp.float32)  # [TM,TN]
    alpha_dst = adst_ref[...]                       # [TM, H] f32
    alpha_src = asrc_ref[...]                       # [H, TN] f32, lane-major
    xw = xw_ref[...]                                # [TN, H*Cp] bf16

    for h in range(heads):                          # static, small head count
        # e[i,s] = leaky_relu(alpha_dst[i] + alpha_src[s]) + mask
        e = alpha_dst[:, h:h + 1] + alpha_src[h:h + 1, :]      # [TM, TN]
        e = jnp.maximum(e, 0.2 * e) + madd                     # LeakyReLU(0.2)

        m_prev = m_sc[:, h:h + 1]
        m_new = jnp.maximum(m_prev, jnp.max(e, axis=-1, keepdims=True))
        scale = jnp.exp(m_prev - m_new)
        p = jnp.exp(e - m_new)                                 # [TM, TN] f32
        l_sc[:, h:h + 1] = scale * l_sc[:, h:h + 1] + jnp.sum(
            p, axis=-1, keepdims=True)
        pv = jnp.dot(p.astype(jnp.bfloat16), xw[:, h * cp:(h + 1) * cp],
                     preferred_element_type=jnp.float32)       # [TM, Cp]
        acc_sc[:, h * cp:(h + 1) * cp] = (
            scale * acc_sc[:, h * cp:(h + 1) * cp] + pv)
        m_sc[:, h:h + 1] = m_new

    @pl.when(j == pl.num_programs(1) - 1)
    def _():
        inv_l = pl.reciprocal(l_sc[...], approx=True)          # [TM, H]
        if concat:
            y = jnp.concatenate(
                [acc_sc[:, h * cp:(h + 1) * cp] * inv_l[:, h:h + 1]
                 for h in range(heads)], axis=-1)
        else:
            y = acc_sc[:, 0:cp] * inv_l[:, 0:1]
            for h in range(1, heads):
                y = y + acc_sc[:, h * cp:(h + 1) * cp] * inv_l[:, h:h + 1]
            y = y * (1.0 / heads)
        # fused bias add + ReLU, single lane-dense store
        y = jnp.maximum(y + bias_ref[...], 0.0)
        out_ref[...] = y.astype(out_ref.dtype)


# ---------------------------------------------------------------------------
# Wrappers
# ---------------------------------------------------------------------------
def _att_matrix(att_src, att_dst, cp, acols):
    """[H*Cp, acols] block-diag matrix; xw @ att_mat = [alpha_src|alpha_dst|0]."""
    heads, c = att_src.shape
    eye = jnp.eye(heads, dtype=jnp.float32)

    def blk(a):
        a = jnp.pad(a.astype(jnp.float32), ((0, 0), (0, cp - c)))       # [H, Cp]
        return (a[:, :, None] * eye[:, None, :]).reshape(heads * cp, heads)

    m = jnp.concatenate([blk(att_src), blk(att_dst)], axis=1)           # [H*Cp,2H]
    return jnp.pad(m, ((0, 0), (0, acols - 2 * heads)))                 # lane-dense


def gat_conv(x, adj, w, att_src, att_dst, bias, *, concat, tm, tn, out_dtype):
    """One GATConv layer (+ fused bias & ReLU). x/adj already padded to n_pad."""
    n_pad = x.shape[0]
    heads, fin, c = w.shape
    cp = _round_up(max(c, 128), 128)           # lane-dense per-head channels
    if concat and c != cp:
        raise NotImplementedError("concat layer assumes out_channels % 128 == 0")
    hcp = heads * cp
    fin_pad = _round_up(fin, 128)              # lane-dense MXU K dimension
    acols = max(128, _round_up(2 * heads, 128))
    vmem = _vmem_budget()

    x = x.astype(jnp.bfloat16)                 # halve stage-1 x DMA
    if fin_pad != fin:
        x = jnp.pad(x, ((0, 0), (0, fin_pad - fin)))

    # [H, Fin, C] -> pad -> [Fin_pad, H*Cp] bf16
    w_p = jnp.pad(w.astype(jnp.float32),
                  ((0, 0), (0, fin_pad - fin), (0, cp - c)))
    w_flat = jnp.transpose(w_p, (1, 0, 2)).reshape(fin_pad, hcp).astype(jnp.bfloat16)
    att_mat = _att_matrix(att_src, att_dst, cp, acols)                   # [H*Cp, acols]

    # ---- stage 1: XW + attention logits ------------------------------------
    grid1 = (n_pad // tm,)
    s1_flops = 2 * n_pad * fin_pad * hcp + 2 * n_pad * hcp * acols
    s1_bytes = (n_pad * fin_pad * 2 + fin_pad * hcp * 2 + hcp * acols * 4
                + n_pad * hcp * 2 + n_pad * acols * 4)
    xw, alphas = pl.pallas_call(
        _gat_stage1_kernel,
        grid=grid1,
        in_specs=[pl.BlockSpec((tm, fin_pad), lambda i: (i, 0)),
                  pl.BlockSpec((fin_pad, hcp), lambda i: (0, 0)),
                  pl.BlockSpec((hcp, acols), lambda i: (0, 0))],
        out_specs=(pl.BlockSpec((tm, hcp), lambda i: (i, 0)),
                   pl.BlockSpec((tm, acols), lambda i: (i, 0))),
        out_shape=(jax.ShapeDtypeStruct((n_pad, hcp), jnp.bfloat16),
                   jax.ShapeDtypeStruct((n_pad, acols), jnp.float32)),
        compiler_params=pltpu.CompilerParams(
            dimension_semantics=("parallel",), vmem_limit_bytes=vmem),
        cost_estimate=pl.CostEstimate(flops=int(s1_flops), transcendentals=0,
                                      bytes_accessed=int(s1_bytes)),
    )(x, w_flat, att_mat)

    # tiny XLA-side transpose -> lane-major alpha_src (avoids in-kernel XLU moves)
    alpha_src = jnp.transpose(alphas[:, :heads])                         # [H, N]
    alpha_dst = alphas[:, heads:2 * heads]                               # [N, H]

    out_pad = hcp if concat else cp
    if concat:
        b = jnp.pad(bias.reshape(heads, c), ((0, 0), (0, cp - c))).reshape(1, hcp)
    else:
        b = jnp.pad(bias.reshape(1, c), ((0, 0), (0, cp - c)))           # [1, Cp]
    b = b.astype(jnp.float32)

    # ---- stage 2: online masked softmax + aggregation ----------------------
    grid2 = (n_pad // tm, n_pad // tn)
    out_itemsize = jnp.dtype(out_dtype).itemsize
    s2_flops = heads * (2 * n_pad * n_pad * cp + 6 * n_pad * n_pad)
    s2_trans = heads * n_pad * n_pad
    s2_bytes = (n_pad * n_pad * 1
                + (n_pad // tm) * (n_pad * hcp * 2 + heads * n_pad * 4)
                + n_pad * heads * 4 + out_pad * 4
                + n_pad * out_pad * out_itemsize)

    kernel = functools.partial(_gat_stage2_kernel, heads=heads, cp=cp,
                               concat=concat)
    out = pl.pallas_call(
        kernel,
        grid=grid2,
        in_specs=[pl.BlockSpec((tm, tn), lambda i, j: (i, j)),        # adj block (int8)
                  pl.BlockSpec((tn, hcp), lambda i, j: (j, 0)),       # XW src tile
                  pl.BlockSpec((heads, tn), lambda i, j: (0, j)),     # alpha_src tile
                  pl.BlockSpec((tm, heads), lambda i, j: (i, 0)),     # alpha_dst rows
                  pl.BlockSpec((1, out_pad), lambda i, j: (0, 0))],   # bias
        out_specs=pl.BlockSpec((tm, out_pad), lambda i, j: (i, 0)),
        out_shape=jax.ShapeDtypeStruct((n_pad, out_pad), out_dtype),
        scratch_shapes=[pltpu.VMEM((tm, heads), jnp.float32),   # running max
                        pltpu.VMEM((tm, heads), jnp.float32),   # running sum
                        pltpu.VMEM((tm, hcp), jnp.float32)],    # running acc
        compiler_params=pltpu.CompilerParams(
            dimension_semantics=("parallel", "arbitrary"),
            vmem_limit_bytes=vmem),
        cost_estimate=pl.CostEstimate(flops=int(s2_flops),
                                      transcendentals=int(s2_trans),
                                      bytes_accessed=int(s2_bytes)),
    )(adj, xw, alpha_src, alpha_dst, b)
    return out  # [n_pad, out_pad]; caller strips node / channel padding


def init_gat_encoder_params(key, num_genes, latent_dim, num_heads):
    """Deterministic glorot-style init matching GATConv parameter shapes."""
    c1 = 128  # hard-coded out_channels of gat_layer_1 in the PyTorch module
    ks = jax.random.split(key, 6)

    def glorot(k, shape, fan_in, fan_out):
        s = jnp.sqrt(6.0 / (fan_in + fan_out))
        return jax.random.uniform(k, shape, jnp.float32, -s, s)

    in2 = c1 * num_heads
    return {
        "w1": glorot(ks[0], (num_heads, num_genes, c1), num_genes, num_heads * c1),
        "att_src1": glorot(ks[1], (num_heads, c1), c1, c1),
        "att_dst1": glorot(ks[2], (num_heads, c1), c1, c1),
        "b1": jnp.zeros((1, num_heads * c1), jnp.float32),
        "w2": glorot(ks[3], (num_heads, in2, latent_dim), in2, num_heads * latent_dim),
        "att_src2": glorot(ks[4], (num_heads, latent_dim), latent_dim, latent_dim),
        "att_dst2": glorot(ks[5], (num_heads, latent_dim), latent_dim, latent_dim),
        "b2": jnp.zeros((1, latent_dim), jnp.float32),
    }


def gat_encoder_forward(params, x, edge_index, num_nodes):
    latent_dim = params["b2"].shape[1]

    # Glue (not the hot path): tiling geometry + dense int8 adjacency mask
    # (adj[dst, src] = 1) with self loops, as in PyG GATConv(add_self_loops=True).
    n_pad, tm, tn = _grid_geometry(num_nodes)

    src, dst = edge_index[0], edge_index[1]
    adj = jnp.zeros((n_pad, n_pad), jnp.int8)
    adj = adj.at[dst, src].set(1)
    idx = jnp.arange(num_nodes)
    adj = adj.at[idx, idx].set(1)            # self loops; padded cols stay 0

    x_pad = jnp.pad(x, ((0, n_pad - num_nodes), (0, 0)))

    # layer-1 output kept in bf16 (halves the h1 HBM round-trip into layer 2)
    h1 = gat_conv(x_pad, adj, params["w1"], params["att_src1"],
                  params["att_dst1"], params["b1"], concat=True,
                  tm=tm, tn=tn, out_dtype=jnp.bfloat16)
    h2 = gat_conv(h1, adj, params["w2"], params["att_src2"],
                  params["att_dst2"], params["b2"], concat=False,
                  tm=tm, tn=tn, out_dtype=jnp.float32)
    # strip node padding and the lane padding of the latent dim
    return h2[:num_nodes, :latent_dim]


if __name__ == "__main__":
    num_genes, latent_dim, num_heads = 32, 16, 4
    num_nodes, num_edges = 8, 16

    key = jax.random.PRNGKey(0)
    kx, ks, kd, kp = jax.random.split(key, 4)

    x = jax.random.normal(kx, (num_nodes, num_genes), jnp.float32)
    src = jax.random.randint(ks, (num_edges,), 0, num_nodes)
    dst = jax.random.randint(kd, (num_edges,), 0, num_nodes)
    edge_index = jnp.stack([src, dst], axis=0)   # [2, E], row0=src, row1=dst

    params = init_gat_encoder_params(kp, num_genes, latent_dim, num_heads)

    out = gat_encoder_forward(params, x, edge_index, num_nodes)
    out = jax.block_until_ready(out)
    assert out.shape == (num_nodes, latent_dim)
    assert bool(jnp.all(jnp.isfinite(out)))
    print("KERNEL_OK")
</pallas_src>

<mosaic_0001>
module attributes {stable_mosaic.version = 11 : i64} {
  func.func @_gat_stage1_kernel(%arg0: i32, %arg1: memref<128x128xbf16, #tpu.memory_space<vmem>>, %arg2: memref<128x512xbf16, #tpu.memory_space<vmem>>, %arg3: memref<512x128xf32, #tpu.memory_space<vmem>>, %arg4: memref<128x512xbf16, #tpu.memory_space<vmem>>, %arg5: memref<128x128xf32, #tpu.memory_space<vmem>>) attributes {dimension_semantics = [#tpu.dimension_semantics<parallel>], iteration_bounds = array<i64: 1>, scalar_prefetch = 0 : i64, scratch_operands = 0 : i64, tpu.core_type = #tpu.core_type<tc>, window_params = [{transform_indices = @transform_0, window_bounds = array<i64: 128, 128>}, {pipeline_mode = #tpu.pipeline_mode<synchronous>, transform_indices = @transform_1, window_bounds = array<i64: 128, 512>}, {pipeline_mode = #tpu.pipeline_mode<synchronous>, transform_indices = @transform_2, window_bounds = array<i64: 512, 128>}, {transform_indices = @transform_3, window_bounds = array<i64: 128, 512>}, {transform_indices = @transform_4, window_bounds = array<i64: 128, 128>}]} {
    %c0 = arith.constant 0 : index
    %c0_0 = arith.constant 0 : index
    %0 = vector.load %arg1[%c0, %c0_0] : memref<128x128xbf16, #tpu.memory_space<vmem>>, vector<128x128xbf16>
    %c0_1 = arith.constant 0 : index
    %c0_2 = arith.constant 0 : index
    %1 = vector.load %arg2[%c0_1, %c0_2] : memref<128x512xbf16, #tpu.memory_space<vmem>>, vector<128x512xbf16>
    %cst = arith.constant dense<0.000000e+00> : vector<128x512xf32>
    %2 = tpu.matmul %0, %1, %cst {dimension_numbers = #tpu.dot_dimension_numbers<[1], [0], [0], [1], [0, 0, 1, 1], [], []>} : vector<128x128xbf16>, vector<128x512xbf16>, vector<128x512xf32> -> vector<128x512xf32>
    %c0_3 = arith.constant 0 : index
    %c0_4 = arith.constant 0 : index
    %3 = vector.load %arg3[%c0_3, %c0_4] : memref<512x128xf32, #tpu.memory_space<vmem>>, vector<512x128xf32>
    %cst_5 = arith.constant dense<0.000000e+00> : vector<128x128xf32>
    %4 = tpu.matmul %2, %3, %cst_5 {dimension_numbers = #tpu.dot_dimension_numbers<[1], [0], [0], [1], [0, 0, 1, 1], [], []>} : vector<128x512xf32>, vector<512x128xf32>, vector<128x128xf32> -> vector<128x128xf32>
    %c0_6 = arith.constant 0 : index
    %c0_7 = arith.constant 0 : index
    %5 = vector.load %arg5[%c0_6, %c0_7] : memref<128x128xf32, #tpu.memory_space<vmem>>, vector<128x128xf32>
    tpu.vector_store %arg5[%c0_6, %c0_7], %4 {strides = array<i32>} : memref<128x128xf32, #tpu.memory_space<vmem>>, vector<128x128xf32>,
    %6 = arith.truncf %2 : vector<128x512xf32> to vector<128x512xbf16>
    %c0_8 = arith.constant 0 : index
    %c0_9 = arith.constant 0 : index
    %7 = vector.load %arg4[%c0_8, %c0_9] : memref<128x512xbf16, #tpu.memory_space<vmem>>, vector<128x512xbf16>
    tpu.vector_store %arg4[%c0_8, %c0_9], %6 {strides = array<i32>} : memref<128x512xbf16, #tpu.memory_space<vmem>>, vector<128x512xbf16>,
    return
  }
  func.func @transform_0(%arg0: i32) -> (i32, i32) {
    %c0_i32 = arith.constant 0 : i32
    %c0_i32_0 = arith.constant 0 : i32
    return %arg0, %c0_i32 : i32, i32
  }
  func.func @transform_1(%arg0: i32) -> (i32, i32) {
    %c0_i32 = arith.constant 0 : i32
    %c0_i32_0 = arith.constant 0 : i32
    %c0_i32_1 = arith.constant 0 : i32
    return %c0_i32, %c0_i32_0 : i32, i32
  }
  func.func @transform_2(%arg0: i32) -> (i32, i32) {
    %c0_i32 = arith.constant 0 : i32
    %c0_i32_0 = arith.constant 0 : i32
    %c0_i32_1 = arith.constant 0 : i32
    return %c0_i32, %c0_i32_0 : i32, i32
  }
  func.func @transform_3(%arg0: i32) -> (i32, i32) {
    %c0_i32 = arith.constant 0 : i32
    %c0_i32_0 = arith.constant 0 : i32
    return %arg0, %c0_i32 : i32, i32
  }
  func.func @transform_4(%arg0: i32) -> (i32, i32) {
    %c0_i32 = arith.constant 0 : i32
    %c0_i32_0 = arith.constant 0 : i32
    return %arg0, %c0_i32 : i32, i32
  }
}

</mosaic_0001>

<bundles_post_ra>
// kernel: tpu_custom_call.1
= control target key start
LH: loop header
LB: loop body
LE: loop exit
PB: predicated region body
PF: predicated region fallthrough
CT: control target
= control target key end

     0   :  { %10 = vsyncpa [#allocation3], 0  ;;  %s1361_s0 = inlined_call_operand.hbm [shape: bf16[128,128], index: 0, kind: input, shape index: {}]   ;;  %s1362_s1 = inlined_call_operand.hbm [shape: bf16[128,512], index: 1, kind: input, shape index: {}]   ;;  %s1363_s2 = inlined_call_operand.hbm [shape: f32[512,128], index: 2, kind: input, shape index: {}]   ;;  %s1364_s3 = inlined_call_operand.hbm [shape: bf16[128,512], index: 3, kind: output, shape index: {0}]   ;;  %s1365_s4 = inlined_call_operand.hbm [shape: f32[128,128], index: 4, kind: output, shape index: {1}]  }
   0x1   :  { %11 = vsyncpa [#allocation6], 0 }
   0x2   :  { %12 = vsyncpa [#allocation4], 0  ;;  %s31_s17 = sshll.u32 %s1362_s1, 4  ;;  %s32_s17 = int_to_ptr.hbm [resolvable:$true] %s31_s17 }
   0x3   :  { %13 = vsyncpa [#allocation10], 0  ;;  %s1298_s18 = smov [#allocation5]   ;;  %s18_s22 = sshll.u32 %s1361_s0, 4  ;;  %s19_s22 = int_to_ptr.hbm [resolvable:$true] %s18_s22 }
   0x4   :  { %s33_s19 = sshll.u32 %s1298_s18, 4  ;;  %s1299_s23 = smov 256   ;;  %s34_s19 = int_to_ptr.vmem [resolvable:$true] %s33_s19 }
   0x5   :  { %s1300_s24 = smov 16   ;;  %s1301_s25 = smov [#allocation2]  }
   0x6   :  { %39 = dma.hbm_to_vmem [thread:$0]  %s32_s17, 4096, %s34_s19, [#allocation6], %s1299_s23, %s1299_s23, %s1300_s24  }
   0x7   :  { %s20_s26 = sshll.u32 %s1301_s25, 4  ;;  %s1302_s1 = smov 64   ;;  %s21_s26 = int_to_ptr.vmem [resolvable:$true] %s20_s26 }
   0x8   :  { %s1303_s27 = smov 4   ;;  %s44_s30 = sshll.u32 %s1363_s2, 4  ;;  %s45_s30 = int_to_ptr.hbm [resolvable:$true] %s44_s30 }
   0x9   :  { %26 = dma.hbm_to_vmem [thread:$0]  %s19_s22, 1024, %s21_s26, [#allocation3], %s1302_s1, %s1302_s1, %s1303_s27  }
   0xa   :  { %s1304_s5 = smov [#allocation7]   ;;  %s1305_s6 = smov 128  }
   0xb   :  { %s46_s0 = sshll.u32 %s1304_s5, 4  ;;  %s1306_s7 = smov 8   ;;  %s47_s0 = int_to_ptr.vmem [resolvable:$true] %s46_s0 }
   0xc   :  { %52 = dma.hbm_to_vmem [thread:$0]  %s45_s30, 8192, %s47_s0, [#allocation6], %s1305_s6, %s1305_s6, %s1306_s7  }
   0xd   :  { %1290 = dma.done.wait [#allocation3], 1024  }
   0xe   :  { %1291 = vsyncadd [#allocation3], 4294966272 }
   0xf   :  { %1292 = dma.done.wait [#allocation6], 12288  }
  0x10   :  { %1293 = vsyncadd [#allocation6], 4294955008  ;;  %v1105_v0 = vld [vmem:[#allocation5 + $0xe0] sm:$0xf]  ;;  %v1157_v1 = vld [vmem:[#allocation5 + $0xec] sm:$0xf0] }
  0x11   :  { %v1155_v2 = vld [vmem:[#allocation5 + $0xe4] sm:$0xf]  ;;  %v1106_v3 = vor.u32 %v1157_v1, %v1105_v0  ;;  %v1107_v4 = vld [vmem:[#allocation5 + $0xf0] sm:$0xf0]  ;;  %v1113_v5 = vld [vmem:[#allocation5 + $0xe8] sm:$0xf] }
  0x12   :  { %v1158_v6 = vld [vmem:[#allocation5 + $0xf4] sm:$0xf0]  ;;  %v1110_v7 = vor.u32 %v1155_v2, %v1107_v4  ;;  %v1156_v9 = vld [vmem:[#allocation5 + $0xec] sm:$0xf]  ;;  %v1115_v10 = vld [vmem:[#allocation5 + $0xf8] sm:$0xf0] }
  0x13   :  { %v1114_v8 = vor.u32 %v1158_v6, %v1113_v5  ;;  %v1089_v11 = vld [vmem:[#allocation5 + $0xc0] sm:$0xf]  ;;  %321 = vmatpush.bf16.msra.mxu0 %v1106_v3  ;;  %v1118_v12 = vor.u32 %v1156_v9, %v1115_v10  ;;  %v1153_v13 = vld [vmem:[#allocation5 + $0xcc] sm:$0xf0]  ;;  %v1151_v14 = vld [vmem:[#allocation5 + $0xc4] sm:$0xf] }
  0x14   :  { %v1091_v15 = vld [vmem:[#allocation5 + $0xd0] sm:$0xf0]  ;;  %370 = vmatpush.bf16.msra.mxu1 %v1110_v7  ;;  %v1090_v16 = vor.u32 %v1153_v13, %v1089_v11  ;;  %v1097_v18 = vld [vmem:[#allocation5 + $0xc8] sm:$0xf]  ;;  %v1154_v19 = vld [vmem:[#allocation5 + $0xd4] sm:$0xf0] }
  0x15   :  { %419 = vmatpush.bf16.msra.mxu2 %v1114_v8  ;;  %v1094_v17 = vor.u32 %v1151_v14, %v1091_v15  ;;  %v1152_v20 = vld [vmem:[#allocation5 + $0xcc] sm:$0xf]  ;;  %468 = vmatpush.bf16.msra.mxu3 %v1118_v12  ;;  %v1098_v21 = vor.u32 %v1154_v19, %v1097_v18  ;;  %v1099_v22 = vld [vmem:[#allocation5 + $0xd8] sm:$0xf0]  ;;  %v1073_v23 = vld [vmem:[#allocation5 + $0xa0] sm:$0xf] }
  0x16   :  { %v1149_v24 = vld [vmem:[#allocation5 + $0xac] sm:$0xf0]  ;;  %v1102_v25 = vor.u32 %v1152_v20, %v1099_v22  ;;  %v1147_v26 = vld [vmem:[#allocation5 + $0xa4] sm:$0xf]  ;;  %v1075_v27 = vld [vmem:[#allocation5 + $0xb0] sm:$0xf0] }
  0x17   :  { %v1081_v28 = vld [vmem:[#allocation5 + $0xa8] sm:$0xf]  ;;  %322 = vmatpush.bf16.msra.mxu0 %v1090_v16  ;;  %v1074_v29 = vor.u32 %v1149_v24, %v1073_v23  ;;  %v1150_v30 = vld [vmem:[#allocation5 + $0xb4] sm:$0xf0]  ;;  %v1148_v31 = vld [vmem:[#allocation5 + $0xac] sm:$0xf]  ;;  %v1078_v33 = vor.u32 %v1147_v26, %v1075_v27 }
  0x18   :  { %v1083_v32 = vld [vmem:[#allocation5 + $0xb8] sm:$0xf0]  ;;  %371 = vmatpush.bf16.msra.mxu1 %v1094_v17  ;;  %v1082_v34 = vor.u32 %v1150_v30, %v1081_v28  ;;  %v1057_v35 = vld [vmem:[#allocation5 + $0x80] sm:$0xf]  ;;  %v1145_v36 = vld [vmem:[#allocation5 + $0x8c] sm:$0xf0] }
  0x19   :  { %420 = vmatpush.bf16.msra.mxu2 %v1098_v21  ;;  %v1143_v37 = vld [vmem:[#allocation5 + $0x84] sm:$0xf]  ;;  %469 = vmatpush.bf16.msra.mxu3 %v1102_v25  ;;  %v1086_v38 = vor.u32 %v1148_v31, %v1083_v32  ;;  %v1059_v39 = vld [vmem:[#allocation5 + $0x90] sm:$0xf0]  ;;  %v1065_v40 = vld [vmem:[#allocation5 + $0x88] sm:$0xf]  ;;  %v1058_v44 = vor.u32 %v1145_v36, %v1057_v35 }
  0x1a   :  { %v1146_v41 = vld [vmem:[#allocation5 + $0x94] sm:$0xf0]  ;;  %v1144_v42 = vld [vmem:[#allocation5 + $0x8c] sm:$0xf]  ;;  %v1067_v43 = vld [vmem:[#allocation5 + $0x98] sm:$0xf0]  ;;  %v1062_v45 = vor.u32 %v1143_v37, %v1059_v39 }
  0x1b   :  { %323 = vmatpush.bf16.msra.mxu0 %v1074_v29  ;;  %v1066_v46 = vor.u32 %v1146_v41, %v1065_v40  ;;  %v1041_v47 = vld [vmem:[#allocation5 + $0x60] sm:$0xf]  ;;  %v1141_v48 = vld [vmem:[#allocation5 + $0x6c] sm:$0xf0]  ;;  %v1139_v49 = vld [vmem:[#allocation5 + $0x64] sm:$0xf]  ;;  %v1070_v50 = vor.u32 %v1144_v42, %v1067_v43 }
  0x1c   :  { %372 = vmatpush.bf16.msra.mxu1 %v1078_v33  ;;  %v1043_v51 = vld [vmem:[#allocation5 + $0x70] sm:$0xf0]  ;;  %v1049_v52 = vld [vmem:[#allocation5 + $0x68] sm:$0xf]  ;;  %v1142_v53 = vld [vmem:[#allocation5 + $0x74] sm:$0xf0]  ;;  %v1042_v56 = vor.u32 %v1141_v48, %v1041_v47 }
  0x1d   :  { %421 = vmatpush.bf16.msra.mxu2 %v1082_v34  ;;  %470 = vmatpush.bf16.msra.mxu3 %v1086_v38  ;;  %v1140_v54 = vld [vmem:[#allocation5 + $0x6c] sm:$0xf]  ;;  %v1051_v55 = vld [vmem:[#allocation5 + $0x78] sm:$0xf0]  ;;  %v1046_v57 = vor.u32 %v1139_v49, %v1043_v51  ;;  %v1050_v58 = vor.u32 %v1142_v53, %v1049_v52  ;;  %v1025_v59 = vld [vmem:[#allocation5 + $0x40] sm:$0xf] }
  0x1e   :  { %v1137_v60 = vld [vmem:[#allocation5 + $0x4c] sm:$0xf0]  ;;  %v1135_v61 = vld [vmem:[#allocation5 + $0x44] sm:$0xf]  ;;  %v1054_v62 = vor.u32 %v1140_v54, %v1051_v55  ;;  %v1027_v63 = vld [vmem:[#allocation5 + $0x50] sm:$0xf0] }
  0x1f   :  { %324 = vmatpush.bf16.msra.mxu0 %v1058_v44  ;;  %v1033_v0 = vld [vmem:[#allocation5 + $0x48] sm:$0xf]  ;;  %v1138_v1 = vld [vmem:[#allocation5 + $0x54] sm:$0xf0]  ;;  %v1136_v2 = vld [vmem:[#allocation5 + $0x4c] sm:$0xf]  ;;  %v1026_v4 = vor.u32 %v1137_v60, %v1025_v59  ;;  %v1030_v5 = vor.u32 %v1135_v61, %v1027_v63 }
  0x20   :  { %373 = vmatpush.bf16.msra.mxu1 %v1062_v45  ;;  %v1035_v3 = vld [vmem:[#allocation5 + $0x58] sm:$0xf0]  ;;  %v1034_v6 = vor.u32 %v1138_v1, %v1033_v0  ;;  %v1009_v7 = vld [vmem:[#allocation5 + $0x20] sm:$0xf]  ;;  %v1133_v8 = vld [vmem:[#allocation5 + $0x2c] sm:$0xf0] }
  0x21   :  { %422 = vmatpush.bf16.msra.mxu2 %v1066_v46  ;;  %471 = vmatpush.bf16.msra.mxu3 %v1070_v50  ;;  %v1131_v9 = vld [vmem:[#allocation5 + $0x24] sm:$0xf]  ;;  %v1038_v10 = vor.u32 %v1136_v2, %v1035_v3  ;;  %v1011_v11 = vld [vmem:[#allocation5 + $0x30] sm:$0xf0]  ;;  %v1017_v12 = vld [vmem:[#allocation5 + $0x28] sm:$0xf]  ;;  %v1010_v16 = vor.u32 %v1133_v8, %v1009_v7 }
  0x22   :  { %v1134_v13 = vld [vmem:[#allocation5 + $0x34] sm:$0xf0]  ;;  %v1132_v14 = vld [vmem:[#allocation5 + $0x2c] sm:$0xf]  ;;  %v1019_v15 = vld [vmem:[#allocation5 + $0x38] sm:$0xf0]  ;;  %v1014_v17 = vor.u32 %v1131_v9, %v1011_v11 }
  0x23   :  { %325 = vmatpush.bf16.msra.mxu0 %v1042_v56  ;;  %v1018_v18 = vor.u32 %v1134_v13, %v1017_v12  ;;  %v993_v19 = vld [vmem:[#allocation5] sm:$0xf]  ;;  %v1129_v20 = vld [vmem:[#allocation5 + $0xc] sm:$0xf0]  ;;  %v1127_v21 = vld [vmem:[#allocation5 + $0x4] sm:$0xf]  ;;  %v1022_v22 = vor.u32 %v1132_v14, %v1019_v15 }
  0x24   :  { %374 = vmatpush.bf16.msra.mxu1 %v1046_v57  ;;  %v995_v23 = vld [vmem:[#allocation5 + $0x10] sm:$0xf0]  ;;  %v1001_v24 = vld [vmem:[#allocation5 + $0x8] sm:$0xf]  ;;  %v1130_v25 = vld [vmem:[#allocation5 + $0x14] sm:$0xf0]  ;;  %v994_v28 = vor.u32 %v1129_v20, %v993_v19 }
  0x25   :  { %423 = vmatpush.bf16.msra.mxu2 %v1050_v58  ;;  %472 = vmatpush.bf16.msra.mxu3 %v1054_v62  ;;  %v1128_v26 = vld [vmem:[#allocation5 + $0xc] sm:$0xf]  ;;  %v1003_v27 = vld [vmem:[#allocation5 + $0x18] sm:$0xf0]  ;;  %v998_v29 = vor.u32 %v1127_v21, %v995_v23  ;;  %v1002_v30 = vor.u32 %v1130_v25, %v1001_v24  ;;  %v1119_v32 = vld [vmem:[#allocation2] sm:$0xff]  ;;  %s1307_s2 = smov [#allocation8]  }
  0x26   :  { %v1006_v31 = vor.u32 %v1128_v26, %v1003_v27  ;;  %v564_v33 = vld [vmem:[#allocation7 + $0x178] sm:$0xff]  ;;  %v563_v37 = vld [vmem:[#allocation7 + $0x170] sm:$0xff]  ;;  %v562_v41 = vld [vmem:[#allocation7 + $0x168] sm:$0xff]  ;;  %s925_s8 = sshll.u32 %s1307_s2, 4  ;;  %s927_s11 = sshll.u32 %s1364_s3, 4  ;;  %s926_s8 = int_to_ptr.vmem [resolvable:$true] %s925_s8  ;;  %s928_s11 = int_to_ptr.hbm [resolvable:$true] %s927_s11 }
  0x27   :  { %326 = vmatpush.bf16.msra.mxu0 %v1026_v4  ;;  %v580_v34 = vld [vmem:[#allocation7 + $0x1f8] sm:$0xff]  ;;  %v579_v38 = vld [vmem:[#allocation7 + $0x1f0] sm:$0xff]  ;;  %v578_v42 = vld [vmem:[#allocation7 + $0x1e8] sm:$0xff]  ;;  %s1308_s3 = smov [#allocation9]   ;;  %s940_s15 = sshll.u32 %s1365_s4, 4  ;;  %s941_s15 = int_to_ptr.hbm [resolvable:$true] %s940_s15 }
  0x28   :  { %375 = vmatpush.bf16.msra.mxu1 %v1030_v5  ;;  %v532_v35 = vld [vmem:[#allocation7 + $0x78] sm:$0xff]  ;;  %v531_v39 = vld [vmem:[#allocation7 + $0x70] sm:$0xff]  ;;  %v530_v43 = vld [vmem:[#allocation7 + $0x68] sm:$0xff]  ;;  %s938_s12 = sshll.u32 %s1308_s3, 4  ;;  %s939_s12 = int_to_ptr.vmem [resolvable:$true] %s938_s12 }
  0x29   :  { %424 = vmatpush.bf16.msra.mxu2 %v1034_v6  ;;  %473 = vmatpush.bf16.msra.mxu3 %v1038_v10  ;;  %v548_v36 = vld [vmem:[#allocation7 + $0xf8] sm:$0xff]  ;;  %v547_v40 = vld [vmem:[#allocation7 + $0xf0] sm:$0xff]  ;;  %v546_v44 = vld [vmem:[#allocation7 + $0xe8] sm:$0xff] }
  0x2a   :  { %v561_v45 = vld [vmem:[#allocation7 + $0x160] sm:$0xff]  ;;  %v560_v49 = vld [vmem:[#allocation7 + $0x158] sm:$0xff]  ;;  %v559_v53 = vld [vmem:[#allocation7 + $0x150] sm:$0xff] }
  0x2b   :  { %327 = vmatpush.bf16.msra.mxu0 %v1010_v16  ;;  %v577_v46 = vld [vmem:[#allocation7 + $0x1e0] sm:$0xff]  ;;  %v576_v50 = vld [vmem:[#allocation7 + $0x1d8] sm:$0xff]  ;;  %v575_v54 = vld [vmem:[#allocation7 + $0x1d0] sm:$0xff] }
  0x2c   :  { %376 = vmatpush.bf16.msra.mxu1 %v1014_v17  ;;  %v529_v47 = vld [vmem:[#allocation7 + $0x60] sm:$0xff]  ;;  %v528_v51 = vld [vmem:[#allocation7 + $0x58] sm:$0xff]  ;;  %v1120_v55 = vld [vmem:[#allocation2 + $0x8] sm:$0xff] }
  0x2d   :  { %425 = vmatpush.bf16.msra.mxu2 %v1018_v18  ;;  %474 = vmatpush.bf16.msra.mxu3 %v1022_v22  ;;  %v545_v48 = vld [vmem:[#allocation7 + $0xe0] sm:$0xff]  ;;  %v544_v52 = vld [vmem:[#allocation7 + $0xd8] sm:$0xff]  ;;  %v527_v56 = vld [vmem:[#allocation7 + $0x50] sm:$0xff] }
  0x2e   :  { %v543_v57 = vld [vmem:[#allocation7 + $0xd0] sm:$0xff]  ;;  %v558_v58 = vld [vmem:[#allocation7 + $0x148] sm:$0xff]  ;;  %v557_v62 = vld [vmem:[#allocation7 + $0x140] sm:$0xff] }
  0x2f   :  { %328 = vmatpush.bf16.msra.mxu0 %v994_v28  ;;  %v574_v59 = vld [vmem:[#allocation7 + $0x1c8] sm:$0xff]  ;;  %v573_v63 = vld [vmem:[#allocation7 + $0x1c0] sm:$0xff]  ;;  %v1121_v0 = vld [vmem:[#allocation2 + $0x10] sm:$0xff] }
  0x30   :  { %377 = vmatpush.bf16.msra.mxu1 %v998_v29  ;;  %v526_v60 = vld [vmem:[#allocation7 + $0x48] sm:$0xff]  ;;  %v525_v1 = vld [vmem:[#allocation7 + $0x40] sm:$0xff]  ;;  %v556_v3 = vld [vmem:[#allocation7 + $0x138] sm:$0xff] }
  0x31   :  { %426 = vmatpush.bf16.msra.mxu2 %v1002_v30  ;;  %475 = vmatpush.bf16.msra.mxu3 %v1006_v31  ;;  %v542_v61 = vld [vmem:[#allocation7 + $0xc8] sm:$0xff]  ;;  %v541_v2 = vld [vmem:[#allocation7 + $0xc0] sm:$0xff]  ;;  %v572_v4 = vld [vmem:[#allocation7 + $0x1b8] sm:$0xff] }
  0x32   :  { %329 = vmatmul.bf16.vlgmr.msra.gmra.mxu0 %v1119_v32  ;;  %v524_v5 = vld [vmem:[#allocation7 + $0x38] sm:$0xff]  ;;  %v555_v7 = vld [vmem:[#allocation7 + $0x130] sm:$0xff]  ;;  %v554_v12 = vld [vmem:[#allocation7 + $0x128] sm:$0xff] }
  0x33   :  { %378 = vmatmul.bf16.vlgmr.msra.gmra.mxu1 %v1119_v32  ;;  %581 = vmatpush.msrb.mxu0 %v532_v35  ;;  %v540_v6 = vld [vmem:[#allocation7 + $0xb8] sm:$0xff]  ;;  %v571_v8 = vld [vmem:[#allocation7 + $0x1b0] sm:$0xff]  ;;  %v570_v13 = vld [vmem:[#allocation7 + $0x1a8] sm:$0xff] }
  0x34   :  { %427 = vmatmul.bf16.vlgmr.msra.gmra.mxu2 %v1119_v32  ;;  %476 = vmatmul.bf16.vlgmr.msra.gmra.mxu3 %v1119_v32  ;;  %v1122_v9 = vld [vmem:[#allocation2 + $0x18] sm:$0xff]  ;;  %v523_v10 = vld [vmem:[#allocation7 + $0x30] sm:$0xff]  ;;  %v522_v14 = vld [vmem:[#allocation7 + $0x28] sm:$0xff] }
  0x35   :  { %711 = vmatpush.msrb.mxu2 %v564_v33  ;;  %776 = vmatpush.msrb.mxu3 %v580_v34  ;;  %v539_v11 = vld [vmem:[#allocation7 + $0xb0] sm:$0xff]  ;;  %v538_v15 = vld [vmem:[#allocation7 + $0xa8] sm:$0xff]  ;;  %v553_v16 = vld [vmem:[#allocation7 + $0x120] sm:$0xff] }
  0x36   :  { %646 = vmatpush.msrb.mxu1 %v548_v36  ;;  %582 = vmatpush.msrb.mxu0 %v531_v39  ;;  %v569_v17 = vld [vmem:[#allocation7 + $0x1a0] sm:$0xff]  ;;  %v552_v21 = vld [vmem:[#allocation7 + $0x118] sm:$0xff]  ;;  %v551_v25 = vld [vmem:[#allocation7 + $0x110] sm:$0xff] }
  0x37   :  { %712 = vmatpush.msrb.mxu2 %v563_v37  ;;  %777 = vmatpush.msrb.mxu3 %v579_v38  ;;  %v1123_v18 = vld [vmem:[#allocation2 + $0x20] sm:$0xff]  ;;  %v568_v22 = vld [vmem:[#allocation7 + $0x198] sm:$0xff]  ;;  %v567_v26 = vld [vmem:[#allocation7 + $0x190] sm:$0xff] }
  0x38   :  { %647 = vmatpush.msrb.mxu1 %v547_v40  ;;  %583 = vmatpush.msrb.mxu0 %v530_v43  ;;  %v521_v19 = vld [vmem:[#allocation7 + $0x20] sm:$0xff]  ;;  %v520_v23 = vld [vmem:[#allocation7 + $0x18] sm:$0xff]  ;;  %v1124_v27 = vld [vmem:[#allocation2 + $0x28] sm:$0xff] }
  0x39   :  { %713 = vmatpush.msrb.mxu2 %v562_v41  ;;  %778 = vmatpush.msrb.mxu3 %v578_v42  ;;  %v537_v20 = vld [vmem:[#allocation7 + $0xa0] sm:$0xff]  ;;  %v536_v24 = vld [vmem:[#allocation7 + $0x98] sm:$0xff]  ;;  %v519_v28 = vld [vmem:[#allocation7 + $0x10] sm:$0xff] }
  0x3a   :  { %648 = vmatpush.msrb.mxu1 %v546_v44  ;;  %584 = vmatpush.msrb.mxu0 %v529_v47  ;;  %v535_v29 = vld [vmem:[#allocation7 + $0x90] sm:$0xff]  ;;  %v550_v30 = vld [vmem:[#allocation7 + $0x108] sm:$0xff]  ;;  %v549_v34 = vld [vmem:[#allocation7 + $0x100] sm:$0xff] }
  0x3b   :  { %714 = vmatpush.msrb.mxu2 %v561_v45  ;;  %779 = vmatpush.msrb.mxu3 %v577_v46  ;;  %v566_v31 = vld [vmem:[#allocation7 + $0x188] sm:$0xff]  ;;  %v1125_v35 = vld [vmem:[#allocation2 + $0x30] sm:$0xff]  ;;  %v517_v36 = vld [vmem:[#allocation7] sm:$0xff] }
  0x3c   :  { %649 = vmatpush.msrb.mxu1 %v545_v48  ;;  %585 = vmatpush.msrb.mxu0 %v528_v51  ;;  %v518_v32 = vld [vmem:[#allocation7 + $0x8] sm:$0xff]  ;;  %v533_v37 = vld [vmem:[#allocation7 + $0x80] sm:$0xff]  ;;  %v1126_v39 = vld [vmem:[#allocation2 + $0x38] sm:$0xff] }
  0x3d   :  { %715 = vmatpush.msrb.mxu2 %v560_v49  ;;  %780 = vmatpush.msrb.mxu3 %v576_v50  ;;  %v534_v33 = vld [vmem:[#allocation7 + $0x88] sm:$0xff]  ;;  %v565_v38 = vld [vmem:[#allocation7 + $0x180] sm:$0xff] }
  0x3e   :  { %650 = vmatpush.msrb.mxu1 %v544_v52  ;;  %586 = vmatpush.msrb.mxu0 %v527_v56 }
  0x3f   :  { %716 = vmatpush.msrb.mxu2 %v559_v53  ;;  %781 = vmatpush.msrb.mxu3 %v575_v54 }
  0x40   :  { %651 = vmatpush.msrb.mxu1 %v543_v57  ;;  %587 = vmatpush.msrb.mxu0 %v526_v60 }
  0x41   :  { %717 = vmatpush.msrb.mxu2 %v558_v58  ;;  %782 = vmatpush.msrb.mxu3 %v574_v59 }
  0x42   :  { %334 = vmatmul.bf16.gmra.mxu0 %v1120_v55  ;;  %652 = vmatpush.msrb.mxu1 %v542_v61 }
  0x43   :  { %383 = vmatmul.bf16.gmra.mxu1 %v1120_v55  ;;  %718 = vmatpush.msrb.mxu2 %v557_v62 }
  0x44   :  { %432 = vmatmul.bf16.gmra.mxu2 %v1120_v55  ;;  %481 = vmatmul.bf16.gmra.mxu3 %v1120_v55 }
  0x45   :  { %783 = vmatpush.msrb.mxu3 %v573_v63  ;;  %588 = vmatpush.msrb.mxu0 %v525_v1 }
  0x46   :  { %653 = vmatpush.msrb.mxu1 %v541_v2  ;;  %719 = vmatpush.msrb.mxu2 %v556_v3 }
  0x47   :  { %784 = vmatpush.msrb.mxu3 %v572_v4  ;;  %589 = vmatpush.msrb.mxu0 %v524_v5 }
  0x48   :  { %654 = vmatpush.msrb.mxu1 %v540_v6  ;;  %720 = vmatpush.msrb.mxu2 %v555_v7 }
  0x49   :  { %785 = vmatpush.msrb.mxu3 %v571_v8  ;;  %590 = vmatpush.msrb.mxu0 %v523_v10 }
  0x4a   :  { %655 = vmatpush.msrb.mxu1 %v539_v11  ;;  %721 = vmatpush.msrb.mxu2 %v554_v12 }
  0x4b   :  { %786 = vmatpush.msrb.mxu3 %v570_v13  ;;  %591 = vmatpush.msrb.mxu0 %v522_v14 }
  0x4c   :  { %656 = vmatpush.msrb.mxu1 %v538_v15  ;;  %722 = vmatpush.msrb.mxu2 %v553_v16 }
  0x4d   :  { %787 = vmatpush.msrb.mxu3 %v569_v17  ;;  %592 = vmatpush.msrb.mxu0 %v521_v19 }
  0x4e   :  { %657 = vmatpush.msrb.mxu1 %v537_v20  ;;  %723 = vmatpush.msrb.mxu2 %v552_v21 }
  0x4f   :  { %788 = vmatpush.msrb.mxu3 %v568_v22  ;;  %593 = vmatpush.msrb.mxu0 %v520_v23 }
  0x50   :  { %658 = vmatpush.msrb.mxu1 %v536_v24  ;;  %724 = vmatpush.msrb.mxu2 %v551_v25 }
  0x51   :  { %789 = vmatpush.msrb.mxu3 %v567_v26  ;;  %594 = vmatpush.msrb.mxu0 %v519_v28 }
  0x52   :  { %339 = vmatmul.bf16.gmra.mxu0 %v1121_v0  ;;  %659 = vmatpush.msrb.mxu1 %v535_v29 }
  0x53   :  { %388 = vmatmul.bf16.gmra.mxu1 %v1121_v0  ;;  %725 = vmatpush.msrb.mxu2 %v550_v30 }
  0x54   :  { %437 = vmatmul.bf16.gmra.mxu2 %v1121_v0  ;;  %486 = vmatmul.bf16.gmra.mxu3 %v1121_v0 }
  0x55   :  { %790 = vmatpush.msrb.mxu3 %v566_v31  ;;  %595 = vmatpush.msrb.mxu0 %v518_v32 }
  0x56   :  { %660 = vmatpush.msrb.mxu1 %v534_v33  ;;  %726 = vmatpush.msrb.mxu2 %v549_v34 }
  0x57   :  { %596 = vmatpush.msrb.mxu0 %v517_v36  ;;  %791 = vmatpush.msrb.mxu3 %v565_v38 }
  0x58   :  { %661 = vmatpush.msrb.mxu1 %v533_v37 }
  0x62   :  { %344 = vmatmul.bf16.gmra.mxu0 %v1122_v9 }
  0x63   :  { %393 = vmatmul.bf16.gmra.mxu1 %v1122_v9 }
  0x64   :  { %442 = vmatmul.bf16.gmra.mxu2 %v1122_v9  ;;  %491 = vmatmul.bf16.gmra.mxu3 %v1122_v9 }
  0x72   :  { %349 = vmatmul.bf16.gmra.mxu0 %v1123_v18 }
  0x73   :  { %398 = vmatmul.bf16.gmra.mxu1 %v1123_v18 }
  0x74   :  { %447 = vmatmul.bf16.gmra.mxu2 %v1123_v18  ;;  %496 = vmatmul.bf16.gmra.mxu3 %v1123_v18 }
  0x82   :  { %354 = vmatmul.bf16.gmra.mxu0 %v1124_v27 }
  0x83   :  { %403 = vmatmul.bf16.gmra.mxu1 %v1124_v27 }
  0x84   :  { %452 = vmatmul.bf16.gmra.mxu2 %v1124_v27  ;;  %501 = vmatmul.bf16.gmra.mxu3 %v1124_v27 }
  0x92   :  { %359 = vmatmul.bf16.gmra.mxu0 %v1125_v35 }
  0x93   :  { %408 = vmatmul.bf16.gmra.mxu1 %v1125_v35 }
  0x94   :  { %457 = vmatmul.bf16.gmra.mxu2 %v1125_v35  ;;  %506 = vmatmul.bf16.gmra.mxu3 %v1125_v35 }
  0xa2   :  { %364 = vmatmul.bf16.gmra.mxu0 %v1126_v39 }
  0xa3   :  { %413 = vmatmul.bf16.gmra.mxu1 %v1126_v39 }
  0xa4   :  { %462 = vmatmul.bf16.gmra.mxu2 %v1126_v39  ;;  %511 = vmatmul.bf16.gmra.mxu3 %v1126_v39 }
  0xaf   :  { %v330_v40 = vpop.f32.mrf.mxu0 }
  0xb0   :  { %v379_v41 = vpop.f32.mrf.mxu1 }
  0xb1   :  { %v857_v42 = vpack.c.bf16 %v379_v41, %v330_v40 }
  0xb2   :  { %597 = vmatmul.f32.vlgmr.msrb.gmra.mxu0 %v330_v40 }
  0xb3   :  { %889 = vst [vmem:[#allocation8] sm:$0xff] %v857_v42  ;;  %662 = vmatmul.f32.vlgmr.msrb.gmra.mxu1 %v379_v41 }
  0xb7   :  { %v428_v43 = vpop.f32.mrf.mxu2  ;;  %v477_v44 = vpop.f32.mrf.mxu3 }
  0xb8   :  { %727 = vmatmul.f32.vlgmr.msrb.gmra.mxu2 %v428_v43  ;;  %v332_v45 = vpop.f32.mrf.mxu0  ;;  %v858_v46 = vpack.c.bf16 %v477_v44, %v428_v43  ;;  %792 = vmatmul.f32.vlgmr.msrb.gmra.mxu3 %v477_v44  ;;  %v381_v47 = vpop.f32.mrf.mxu1 }
  0xb9   :  { %v859_v48 = vpack.c.bf16 %v381_v47, %v332_v45 }
  0xba   :  { %890 = vst [vmem:[#allocation8 + $0x8] sm:$0xff] %v858_v46  ;;  %600 = vmatmul.f32.gmra.mxu0 %v332_v45 }
  0xbb   :  { %891 = vst [vmem:[#allocation8 + $0x10] sm:$0xff] %v859_v48  ;;  %665 = vmatmul.f32.gmra.mxu1 %v381_v47 }
  0xbf   :  { %v430_v49 = vpop.f32.mrf.mxu2  ;;  %v479_v50 = vpop.f32.mrf.mxu3 }
  0xc0   :  { %730 = vmatmul.f32.gmra.mxu2 %v430_v49  ;;  %v335_v51 = vpop.f32.mrf.mxu0  ;;  %v860_v52 = vpack.c.bf16 %v479_v50, %v430_v49  ;;  %795 = vmatmul.f32.gmra.mxu3 %v479_v50  ;;  %v384_v53 = vpop.f32.mrf.mxu1 }
  0xc1   :  { %v861_v54 = vpack.c.bf16 %v384_v53, %v335_v51 }
  0xc2   :  { %892 = vst [vmem:[#allocation8 + $0x18] sm:$0xff] %v860_v52  ;;  %603 = vmatmul.f32.gmra.mxu0 %v335_v51 }
  0xc3   :  { %893 = vst [vmem:[#allocation8 + $0x20] sm:$0xff] %v861_v54  ;;  %668 = vmatmul.f32.gmra.mxu1 %v384_v53 }
  0xc7   :  { %v433_v55 = vpop.f32.mrf.mxu2  ;;  %v482_v56 = vpop.f32.mrf.mxu3 }
  0xc8   :  { %733 = vmatmul.f32.gmra.mxu2 %v433_v55  ;;  %v337_v57 = vpop.f32.mrf.mxu0  ;;  %v862_v58 = vpack.c.bf16 %v482_v56, %v433_v55  ;;  %798 = vmatmul.f32.gmra.mxu3 %v482_v56  ;;  %v386_v59 = vpop.f32.mrf.mxu1 }
  0xc9   :  { %v863_v60 = vpack.c.bf16 %v386_v59, %v337_v57 }
  0xca   :  { %894 = vst [vmem:[#allocation8 + $0x28] sm:$0xff] %v862_v58  ;;  %606 = vmatmul.f32.gmra.mxu0 %v337_v57 }
  0xcb   :  { %895 = vst [vmem:[#allocation8 + $0x30] sm:$0xff] %v863_v60  ;;  %671 = vmatmul.f32.gmra.mxu1 %v386_v59 }
  0xcf   :  { %v435_v61 = vpop.f32.mrf.mxu2  ;;  %v484_v62 = vpop.f32.mrf.mxu3 }
  0xd0   :  { %736 = vmatmul.f32.gmra.mxu2 %v435_v61  ;;  %v340_v63 = vpop.f32.mrf.mxu0  ;;  %v864_v0 = vpack.c.bf16 %v484_v62, %v435_v61  ;;  %801 = vmatmul.f32.gmra.mxu3 %v484_v62  ;;  %v389_v1 = vpop.f32.mrf.mxu1 }
  0xd1   :  { %v865_v2 = vpack.c.bf16 %v389_v1, %v340_v63 }
  0xd2   :  { %896 = vst [vmem:[#allocation8 + $0x38] sm:$0xff] %v864_v0  ;;  %609 = vmatmul.f32.gmra.mxu0 %v340_v63 }
  0xd3   :  { %897 = vst [vmem:[#allocation8 + $0x40] sm:$0xff] %v865_v2  ;;  %674 = vmatmul.f32.gmra.mxu1 %v389_v1 }
  0xd7   :  { %v438_v3 = vpop.f32.mrf.mxu2  ;;  %v487_v4 = vpop.f32.mrf.mxu3 }
  0xd8   :  { %739 = vmatmul.f32.gmra.mxu2 %v438_v3  ;;  %v342_v5 = vpop.f32.mrf.mxu0  ;;  %v866_v6 = vpack.c.bf16 %v487_v4, %v438_v3  ;;  %804 = vmatmul.f32.gmra.mxu3 %v487_v4  ;;  %v391_v7 = vpop.f32.mrf.mxu1 }
  0xd9   :  { %v867_v8 = vpack.c.bf16 %v391_v7, %v342_v5 }
  0xda   :  { %898 = vst [vmem:[#allocation8 + $0x48] sm:$0xff] %v866_v6  ;;  %612 = vmatmul.f32.gmra.mxu0 %v342_v5 }
  0xdb   :  { %899 = vst [vmem:[#allocation8 + $0x50] sm:$0xff] %v867_v8  ;;  %677 = vmatmul.f32.gmra.mxu1 %v391_v7 }
  0xdf   :  { %v440_v9 = vpop.f32.mrf.mxu2  ;;  %v489_v10 = vpop.f32.mrf.mxu3 }
  0xe0   :  { %742 = vmatmul.f32.gmra.mxu2 %v440_v9  ;;  %v345_v11 = vpop.f32.mrf.mxu0  ;;  %v868_v12 = vpack.c.bf16 %v489_v10, %v440_v9  ;;  %807 = vmatmul.f32.gmra.mxu3 %v489_v10  ;;  %v394_v13 = vpop.f32.mrf.mxu1 }
  0xe1   :  { %v869_v14 = vpack.c.bf16 %v394_v13, %v345_v11 }
  0xe2   :  { %900 = vst [vmem:[#allocation8 + $0x58] sm:$0xff] %v868_v12  ;;  %615 = vmatmul.f32.gmra.mxu0 %v345_v11 }
  0xe3   :  { %901 = vst [vmem:[#allocation8 + $0x60] sm:$0xff] %v869_v14  ;;  %680 = vmatmul.f32.gmra.mxu1 %v394_v13 }
  0xe7   :  { %v443_v15 = vpop.f32.mrf.mxu2  ;;  %v492_v16 = vpop.f32.mrf.mxu3 }
  0xe8   :  { %745 = vmatmul.f32.gmra.mxu2 %v443_v15  ;;  %v347_v17 = vpop.f32.mrf.mxu0  ;;  %v870_v18 = vpack.c.bf16 %v492_v16, %v443_v15  ;;  %810 = vmatmul.f32.gmra.mxu3 %v492_v16  ;;  %v396_v19 = vpop.f32.mrf.mxu1 }
  0xe9   :  { %v871_v20 = vpack.c.bf16 %v396_v19, %v347_v17 }
  0xea   :  { %902 = vst [vmem:[#allocation8 + $0x68] sm:$0xff] %v870_v18  ;;  %618 = vmatmul.f32.gmra.mxu0 %v347_v17 }
  0xeb   :  { %903 = vst [vmem:[#allocation8 + $0x70] sm:$0xff] %v871_v20  ;;  %683 = vmatmul.f32.gmra.mxu1 %v396_v19 }
  0xef   :  { %v445_v21 = vpop.f32.mrf.mxu2  ;;  %v494_v22 = vpop.f32.mrf.mxu3 }
  0xf0   :  { %748 = vmatmul.f32.gmra.mxu2 %v445_v21  ;;  %v350_v23 = vpop.f32.mrf.mxu0  ;;  %v872_v24 = vpack.c.bf16 %v494_v22, %v445_v21  ;;  %813 = vmatmul.f32.gmra.mxu3 %v494_v22  ;;  %v399_v25 = vpop.f32.mrf.mxu1 }
  0xf1   :  { %v873_v26 = vpack.c.bf16 %v399_v25, %v350_v23 }
  0xf2   :  { %904 = vst [vmem:[#allocation8 + $0x78] sm:$0xff] %v872_v24  ;;  %621 = vmatmul.f32.gmra.mxu0 %v350_v23 }
  0xf3   :  { %905 = vst [vmem:[#allocation8 + $0x80] sm:$0xff] %v873_v26  ;;  %686 = vmatmul.f32.gmra.mxu1 %v399_v25 }
  0xf7   :  { %v448_v27 = vpop.f32.mrf.mxu2  ;;  %v497_v28 = vpop.f32.mrf.mxu3 }
  0xf8   :  { %751 = vmatmul.f32.gmra.mxu2 %v448_v27  ;;  %v352_v29 = vpop.f32.mrf.mxu0  ;;  %v874_v30 = vpack.c.bf16 %v497_v28, %v448_v27  ;;  %816 = vmatmul.f32.gmra.mxu3 %v497_v28  ;;  %v401_v31 = vpop.f32.mrf.mxu1 }
  0xf9   :  { %v875_v32 = vpack.c.bf16 %v401_v31, %v352_v29 }
  0xfa   :  { %906 = vst [vmem:[#allocation8 + $0x88] sm:$0xff] %v874_v30  ;;  %624 = vmatmul.f32.gmra.mxu0 %v352_v29 }
  0xfb   :  { %907 = vst [vmem:[#allocation8 + $0x90] sm:$0xff] %v875_v32  ;;  %689 = vmatmul.f32.gmra.mxu1 %v401_v31 }
  0xff   :  { %v450_v33 = vpop.f32.mrf.mxu2  ;;  %v499_v34 = vpop.f32.mrf.mxu3 }
 0x100   :  { %754 = vmatmul.f32.gmra.mxu2 %v450_v33  ;;  %v355_v35 = vpop.f32.mrf.mxu0  ;;  %v876_v36 = vpack.c.bf16 %v499_v34, %v450_v33  ;;  %819 = vmatmul.f32.gmra.mxu3 %v499_v34  ;;  %v404_v37 = vpop.f32.mrf.mxu1 }
 0x101   :  { %v877_v38 = vpack.c.bf16 %v404_v37, %v355_v35 }
 0x102   :  { %908 = vst [vmem:[#allocation8 + $0x98] sm:$0xff] %v876_v36  ;;  %627 = vmatmul.f32.gmra.mxu0 %v355_v35 }
 0x103   :  { %909 = vst [vmem:[#allocation8 + $0xa0] sm:$0xff] %v877_v38  ;;  %692 = vmatmul.f32.gmra.mxu1 %v404_v37 }
 0x107   :  { %v453_v39 = vpop.f32.mrf.mxu2  ;;  %v502_v40 = vpop.f32.mrf.mxu3 }
 0x108   :  { %757 = vmatmul.f32.gmra.mxu2 %v453_v39  ;;  %v357_v41 = vpop.f32.mrf.mxu0  ;;  %v878_v42 = vpack.c.bf16 %v502_v40, %v453_v39  ;;  %822 = vmatmul.f32.gmra.mxu3 %v502_v40  ;;  %v406_v43 = vpop.f32.mrf.mxu1 }
 0x109   :  { %v879_v44 = vpack.c.bf16 %v406_v43, %v357_v41 }
 0x10a   :  { %910 = vst [vmem:[#allocation8 + $0xa8] sm:$0xff] %v878_v42  ;;  %630 = vmatmul.f32.gmra.mxu0 %v357_v41 }
 0x10b   :  { %911 = vst [vmem:[#allocation8 + $0xb0] sm:$0xff] %v879_v44  ;;  %695 = vmatmul.f32.gmra.mxu1 %v406_v43 }
 0x10f   :  { %v455_v45 = vpop.f32.mrf.mxu2  ;;  %v504_v46 = vpop.f32.mrf.mxu3 }
 0x110   :  { %760 = vmatmul.f32.gmra.mxu2 %v455_v45  ;;  %v360_v47 = vpop.f32.mrf.mxu0  ;;  %v880_v48 = vpack.c.bf16 %v504_v46, %v455_v45  ;;  %825 = vmatmul.f32.gmra.mxu3 %v504_v46  ;;  %v409_v49 = vpop.f32.mrf.mxu1 }
 0x111   :  { %v881_v50 = vpack.c.bf16 %v409_v49, %v360_v47 }
 0x112   :  { %912 = vst [vmem:[#allocation8 + $0xb8] sm:$0xff] %v880_v48  ;;  %633 = vmatmul.f32.gmra.mxu0 %v360_v47 }
 0x113   :  { %913 = vst [vmem:[#allocation8 + $0xc0] sm:$0xff] %v881_v50  ;;  %698 = vmatmul.f32.gmra.mxu1 %v409_v49 }
 0x117   :  { %v458_v51 = vpop.f32.mrf.mxu2  ;;  %v507_v52 = vpop.f32.mrf.mxu3 }
 0x118   :  { %763 = vmatmul.f32.gmra.mxu2 %v458_v51  ;;  %v362_v53 = vpop.f32.mrf.mxu0  ;;  %v882_v54 = vpack.c.bf16 %v507_v52, %v458_v51  ;;  %828 = vmatmul.f32.gmra.mxu3 %v507_v52  ;;  %v411_v55 = vpop.f32.mrf.mxu1 }
 0x119   :  { %v883_v56 = vpack.c.bf16 %v411_v55, %v362_v53 }
 0x11a   :  { %914 = vst [vmem:[#allocation8 + $0xc8] sm:$0xff] %v882_v54  ;;  %636 = vmatmul.f32.gmra.mxu0 %v362_v53 }
 0x11b   :  { %915 = vst [vmem:[#allocation8 + $0xd0] sm:$0xff] %v883_v56  ;;  %701 = vmatmul.f32.gmra.mxu1 %v411_v55 }
 0x11f   :  { %v460_v57 = vpop.f32.mrf.mxu2  ;;  %v509_v58 = vpop.f32.mrf.mxu3 }
 0x120   :  { %766 = vmatmul.f32.gmra.mxu2 %v460_v57  ;;  %v365_v59 = vpop.f32.mrf.mxu0  ;;  %v884_v60 = vpack.c.bf16 %v509_v58, %v460_v57  ;;  %831 = vmatmul.f32.gmra.mxu3 %v509_v58  ;;  %v414_v61 = vpop.f32.mrf.mxu1 }
 0x121   :  { %v885_v62 = vpack.c.bf16 %v414_v61, %v365_v59 }
 0x122   :  { %916 = vst [vmem:[#allocation8 + $0xd8] sm:$0xff] %v884_v60  ;;  %639 = vmatmul.f32.gmra.mxu0 %v365_v59 }
 0x123   :  { %917 = vst [vmem:[#allocation8 + $0xe0] sm:$0xff] %v885_v62  ;;  %704 = vmatmul.f32.gmra.mxu1 %v414_v61 }
 0x127   :  { %v463_v63 = vpop.f32.mrf.mxu2  ;;  %v512_v0 = vpop.f32.mrf.mxu3 }
 0x128   :  { %769 = vmatmul.f32.gmra.mxu2 %v463_v63  ;;  %v367_v1 = vpop.f32.mrf.mxu0  ;;  %v886_v2 = vpack.c.bf16 %v512_v0, %v463_v63  ;;  %834 = vmatmul.f32.gmra.mxu3 %v512_v0  ;;  %v416_v3 = vpop.f32.mrf.mxu1 }
 0x129   :  { %v887_v4 = vpack.c.bf16 %v416_v3, %v367_v1 }
 0x12a   :  { %918 = vst [vmem:[#allocation8 + $0xe8] sm:$0xff] %v886_v2  ;;  %642 = vmatmul.f32.gmra.mxu0 %v367_v1 }
 0x12b   :  { %919 = vst [vmem:[#allocation8 + $0xf0] sm:$0xff] %v887_v4  ;;  %707 = vmatmul.f32.gmra.mxu1 %v416_v3 }
 0x12f   :  { %v465_v5 = vpop.f32.mrf.mxu2  ;;  %v514_v6 = vpop.f32.mrf.mxu3 }
 0x130   :  { %772 = vmatmul.f32.gmra.mxu2 %v465_v5  ;;  %v598_v7 = vpop.f32.mrf.mxu0  ;;  %v888_v8 = vpack.c.bf16 %v514_v6, %v465_v5  ;;  %837 = vmatmul.f32.gmra.mxu3 %v514_v6  ;;  %v663_v9 = vpop.f32.mrf.mxu1 }
 0x131   :  { %v664_v12 = vadd.f32 %v663_v9, %v598_v7 }
 0x132   :  { %920 = vst [vmem:[#allocation8 + $0xf8] sm:$0xff] %v888_v8 }
 0x133   :  { %933 = dma.vmem_to_hbm [thread:$0]  %s926_s8, 4096, %s928_s11, [#allocation4], %s1299_s23, %s1299_s23, %s1300_s24  }
 0x138   :  { %v601_v10 = vpop.f32.mrf.mxu0  ;;  %v666_v11 = vpop.f32.mrf.mxu1 }
 0x139   :  { %v667_v19 = vadd.f32 %v666_v11, %v601_v10 }
 0x13b   :  { %v728_v13 = vpop.f32.mrf.mxu2  ;;  %v793_v15 = vpop.f32.mrf.mxu3 }
 0x13c   :  { %v729_v14 = vadd.f32 %v728_v13, %v664_v12 }
 0x13e   :  { %v794_v16 = vadd.f32 %v793_v15, %v729_v14 }
 0x140   :  { %841 = vst [vmem:[#allocation9] sm:$0xff] %v794_v16  ;;  %v604_v17 = vpop.f32.mrf.mxu0  ;;  %v669_v18 = vpop.f32.mrf.mxu1 }
 0x141   :  { %v670_v26 = vadd.f32 %v669_v18, %v604_v17 }
 0x143   :  { %v731_v20 = vpop.f32.mrf.mxu2  ;;  %v796_v22 = vpop.f32.mrf.mxu3 }
 0x144   :  { %v732_v21 = vadd.f32 %v731_v20, %v667_v19 }
 0x146   :  { %v797_v23 = vadd.f32 %v796_v22, %v732_v21 }
 0x148   :  { %842 = vst [vmem:[#allocation9 + $0x8] sm:$0xff] %v797_v23  ;;  %v607_v24 = vpop.f32.mrf.mxu0  ;;  %v672_v25 = vpop.f32.mrf.mxu1 }
 0x149   :  { %v673_v33 = vadd.f32 %v672_v25, %v607_v24 }
 0x14b   :  { %v734_v27 = vpop.f32.mrf.mxu2  ;;  %v799_v29 = vpop.f32.mrf.mxu3 }
 0x14c   :  { %v735_v28 = vadd.f32 %v734_v27, %v670_v26 }
 0x14e   :  { %v800_v30 = vadd.f32 %v799_v29, %v735_v28 }
 0x150   :  { %843 = vst [vmem:[#allocation9 + $0x10] sm:$0xff] %v800_v30  ;;  %v610_v31 = vpop.f32.mrf.mxu0  ;;  %v675_v32 = vpop.f32.mrf.mxu1 }
 0x151   :  { %v676_v40 = vadd.f32 %v675_v32, %v610_v31 }
 0x153   :  { %v737_v34 = vpop.f32.mrf.mxu2  ;;  %v802_v36 = vpop.f32.mrf.mxu3 }
 0x154   :  { %v738_v35 = vadd.f32 %v737_v34, %v673_v33 }
 0x156   :  { %v803_v37 = vadd.f32 %v802_v36, %v738_v35 }
 0x158   :  { %844 = vst [vmem:[#allocation9 + $0x18] sm:$0xff] %v803_v37  ;;  %v613_v38 = vpop.f32.mrf.mxu0  ;;  %v678_v39 = vpop.f32.mrf.mxu1 }
 0x159   :  { %v679_v47 = vadd.f32 %v678_v39, %v613_v38 }
 0x15b   :  { %v740_v41 = vpop.f32.mrf.mxu2  ;;  %v805_v43 = vpop.f32.mrf.mxu3 }
 0x15c   :  { %v741_v42 = vadd.f32 %v740_v41, %v676_v40 }
 0x15e   :  { %v806_v44 = vadd.f32 %v805_v43, %v741_v42 }
 0x160   :  { %845 = vst [vmem:[#allocation9 + $0x20] sm:$0xff] %v806_v44  ;;  %v616_v45 = vpop.f32.mrf.mxu0  ;;  %v681_v46 = vpop.f32.mrf.mxu1 }
 0x161   :  { %v682_v54 = vadd.f32 %v681_v46, %v616_v45 }
 0x163   :  { %v743_v48 = vpop.f32.mrf.mxu2  ;;  %v808_v50 = vpop.f32.mrf.mxu3 }
 0x164   :  { %v744_v49 = vadd.f32 %v743_v48, %v679_v47 }
 0x166   :  { %v809_v51 = vadd.f32 %v808_v50, %v744_v49 }
 0x168   :  { %846 = vst [vmem:[#allocation9 + $0x28] sm:$0xff] %v809_v51  ;;  %v619_v52 = vpop.f32.mrf.mxu0  ;;  %v684_v53 = vpop.f32.mrf.mxu1 }
 0x169   :  { %v685_v61 = vadd.f32 %v684_v53, %v619_v52 }
 0x16b   :  { %v746_v55 = vpop.f32.mrf.mxu2  ;;  %v811_v57 = vpop.f32.mrf.mxu3 }
 0x16c   :  { %v747_v56 = vadd.f32 %v746_v55, %v682_v54 }
 0x16e   :  { %v812_v58 = vadd.f32 %v811_v57, %v747_v56 }
 0x170   :  { %847 = vst [vmem:[#allocation9 + $0x30] sm:$0xff] %v812_v58  ;;  %v622_v59 = vpop.f32.mrf.mxu0  ;;  %v687_v60 = vpop.f32.mrf.mxu1 }
 0x171   :  { %v688_v4 = vadd.f32 %v687_v60, %v622_v59 }
 0x173   :  { %v749_v62 = vpop.f32.mrf.mxu2  ;;  %v814_v0 = vpop.f32.mrf.mxu3 }
 0x174   :  { %v750_v63 = vadd.f32 %v749_v62, %v685_v61 }
 0x176   :  { %v815_v1 = vadd.f32 %v814_v0, %v750_v63 }
 0x178   :  { %848 = vst [vmem:[#allocation9 + $0x38] sm:$0xff] %v815_v1  ;;  %v625_v2 = vpop.f32.mrf.mxu0  ;;  %v690_v3 = vpop.f32.mrf.mxu1 }
 0x179   :  { %v691_v11 = vadd.f32 %v690_v3, %v625_v2 }
 0x17b   :  { %v752_v5 = vpop.f32.mrf.mxu2  ;;  %v817_v7 = vpop.f32.mrf.mxu3 }
 0x17c   :  { %v753_v6 = vadd.f32 %v752_v5, %v688_v4 }
 0x17e   :  { %v818_v8 = vadd.f32 %v817_v7, %v753_v6 }
 0x180   :  { %849 = vst [vmem:[#allocation9 + $0x40] sm:$0xff] %v818_v8  ;;  %v628_v9 = vpop.f32.mrf.mxu0  ;;  %v693_v10 = vpop.f32.mrf.mxu1 }
 0x181   :  { %v694_v18 = vadd.f32 %v693_v10, %v628_v9 }
 0x183   :  { %v755_v12 = vpop.f32.mrf.mxu2  ;;  %v820_v14 = vpop.f32.mrf.mxu3 }
 0x184   :  { %v756_v13 = vadd.f32 %v755_v12, %v691_v11 }
 0x186   :  { %v821_v15 = vadd.f32 %v820_v14, %v756_v13 }
 0x188   :  { %850 = vst [vmem:[#allocation9 + $0x48] sm:$0xff] %v821_v15  ;;  %v631_v16 = vpop.f32.mrf.mxu0  ;;  %v696_v17 = vpop.f32.mrf.mxu1 }
 0x189   :  { %v697_v25 = vadd.f32 %v696_v17, %v631_v16 }
 0x18b   :  { %v758_v19 = vpop.f32.mrf.mxu2  ;;  %v823_v21 = vpop.f32.mrf.mxu3 }
 0x18c   :  { %v759_v20 = vadd.f32 %v758_v19, %v694_v18 }
 0x18e   :  { %v824_v22 = vadd.f32 %v823_v21, %v759_v20 }
 0x190   :  { %851 = vst [vmem:[#allocation9 + $0x50] sm:$0xff] %v824_v22  ;;  %v634_v23 = vpop.f32.mrf.mxu0  ;;  %v699_v24 = vpop.f32.mrf.mxu1 }
 0x191   :  { %v700_v30 = vadd.f32 %v699_v24, %v634_v23 }
 0x193   :  { %v761_v26 = vpop.f32.mrf.mxu2  ;;  %v826_v28 = vpop.f32.mrf.mxu3 }
 0x194   :  { %v762_v27 = vadd.f32 %v761_v26, %v697_v25 }
 0x196   :  { %v827_v29 = vadd.f32 %v826_v28, %v762_v27 }
 0x198   :  { %852 = vst [vmem:[#allocation9 + $0x58] sm:$0xff] %v827_v29  ;;  %v637_v31 = vpop.f32.mrf.mxu0  ;;  %v702_v32 = vpop.f32.mrf.mxu1 }
 0x199   :  { %v703_v37 = vadd.f32 %v702_v32, %v637_v31 }
 0x19b   :  { %v764_v33 = vpop.f32.mrf.mxu2  ;;  %v829_v35 = vpop.f32.mrf.mxu3 }
 0x19c   :  { %v765_v34 = vadd.f32 %v764_v33, %v700_v30 }
 0x19e   :  { %v830_v36 = vadd.f32 %v829_v35, %v765_v34 }
 0x1a0   :  { %853 = vst [vmem:[#allocation9 + $0x60] sm:$0xff] %v830_v36  ;;  %v640_v41 = vpop.f32.mrf.mxu0  ;;  %v705_v42 = vpop.f32.mrf.mxu1 }
 0x1a1   :  { %v706_v44 = vadd.f32 %v705_v42, %v640_v41 }
 0x1a3   :  { %v767_v38 = vpop.f32.mrf.mxu2  ;;  %v832_v40 = vpop.f32.mrf.mxu3 }
 0x1a4   :  { %v768_v39 = vadd.f32 %v767_v38, %v703_v37 }
 0x1a6   :  { %v833_v43 = vadd.f32 %v832_v40, %v768_v39 }
 0x1a8   :  { %854 = vst [vmem:[#allocation9 + $0x68] sm:$0xff] %v833_v43  ;;  %v643_v49 = vpop.f32.mrf.mxu0  ;;  %v708_v50 = vpop.f32.mrf.mxu1 }
 0x1a9   :  { %v709_v51 = vadd.f32 %v708_v50, %v643_v49 }
 0x1ab   :  { %v770_v45 = vpop.f32.mrf.mxu2  ;;  %v835_v47 = vpop.f32.mrf.mxu3 }
 0x1ac   :  { %v771_v46 = vadd.f32 %v770_v45, %v706_v44 }
 0x1ae   :  { %v836_v48 = vadd.f32 %v835_v47, %v771_v46 }
 0x1b0   :  { %855 = vst [vmem:[#allocation9 + $0x70] sm:$0xff] %v836_v48 }
 0x1b3   :  { %v773_v52 = vpop.f32.mrf.mxu2  ;;  %v838_v54 = vpop.f32.mrf.mxu3 }
 0x1b4   :  { %v774_v53 = vadd.f32 %v773_v52, %v709_v51 }
 0x1b6   :  { %v839_v55 = vadd.f32 %v838_v54, %v774_v53 }
 0x1b8   :  { %856 = vst [vmem:[#allocation9 + $0x78] sm:$0xff] %v839_v55 }
 0x1b9   :  { %946 = dma.vmem_to_hbm [thread:$0]  %s939_s12, 2048, %s941_s15, [#allocation10], %s1305_s6, %s1305_s6, %s1306_s7  }
 0x1ba   :  { %1294 = dma.done.wait [#allocation4], 4096  }
 0x1bb   :  { %1295 = vsyncadd [#allocation4], 4294963200 }
 0x1bc   :  { %1296 = dma.done.wait [#allocation10], 2048  }
 0x1bd   :  { %1297 = vsyncadd [#allocation10], 4294965248 }
 0x1be   :  { %955 = vsyncpa [#allocation3], 1 }
 0x1bf   :  { %956 = vsyncpa [#allocation6], 1 }
 0x1c0   :  { %957 = vsyncpa [#allocation4], 1 }
 0x1c1   :  { %958 = vsyncpa [#allocation10], 1 }

</bundles_post_ra>
